<compile_context>
chip_gen: v6e
topology: v6e:2x2x1
jax: 0.10.0
libtpu: 0.0.40
codegen_flags: <defaults>
</compile_context>

<pallas_src>
import functools

import jax
import jax.numpy as jnp
from jax.experimental import pallas as pl
from jax.experimental.pallas import tpu as pltpu

BN_EPS = 1e-5


def _make_divisible(ch, divisor=8, min_ch=None):
    if min_ch is None:
        min_ch = divisor
    new_ch = max(min_ch, int(ch + divisor / 2) // divisor * divisor)
    if new_ch < 0.9 * ch:
        new_ch += divisor
    return new_ch


def _hardswish(x):
    return x * jnp.clip(x + 3.0, 0.0, 6.0) * (1.0 / 6.0)


def _relu6(x):
    return jnp.clip(x, 0.0, 6.0)


def _hardsigmoid(x):
    return jnp.clip(x + 3.0, 0.0, 6.0) * (1.0 / 6.0)


# ----------------------------- fused Pallas kernel --------------------------

def _fused_kernel(x_ref, w1_ref, wfc1_ref, wfc2_ref, w3_ref, vecs_ref, out_ref,
                  *, inv_hw, use_res, c_exp, c_se, c_out):
    """One grid step = one image. Layout: channels on sublanes, HW on lanes.

    vecs_ref (Cexp, 4) f32 columns: [b1, dw_scale, dw_bias, b3(padded)].
    wfc1_ref (Cexp+1, Cse) f32: fc1_w.T with fc1 bias appended as last row.
    wfc2_ref (Cse+1, Cexp) f32: fc2_w.T with fc2 bias appended as last row.
    """
    x = x_ref[0]                                               # (Cin, HW) f32

    b1 = vecs_ref[:, 0:1]                                      # (Cexp, 1)
    sdw = vecs_ref[:, 1:2]                                     # (Cexp, 1)
    bdw = vecs_ref[:, 2:3]                                     # (Cexp, 1)
    b3 = vecs_ref[0:c_out, 3:4]                                # (Cout, 1)

    # expand 1x1 conv (BN scale already folded into bf16 weight) + bias + HS
    h = jnp.dot(w1_ref[...], x.astype(jnp.bfloat16),
                preferred_element_type=jnp.float32)            # (Cexp, HW) f32
    h = _hardswish(h + b1)

    # 1x1 depthwise conv (per-channel scale) folded with BN + Hardswish
    h = _hardswish(h * sdw + bdw)

    # bf16 copy for the project matmul; SE pooling stays in f32
    h_bf16 = h.astype(jnp.bfloat16)

    # --- SE block (once per image, all tiny, f32) ---
    mean = jnp.sum(h, axis=1, keepdims=True) * inv_hw          # (Cexp, 1)
    # fc1: VPU multiply + sublane reduce -> row (1, Cse); bias is last row.
    z1 = _relu6(
        jnp.sum(wfc1_ref[0:c_exp, :] * mean, axis=0, keepdims=True)
        + wfc1_ref[c_exp:c_exp + 1, :])                        # (1, Cse)
    # fc2: single row matvec on the MXU -> row (1, Cexp); bias is last row.
    z2 = jnp.dot(z1, wfc2_ref[0:c_se, :],
                 preferred_element_type=jnp.float32) + wfc2_ref[c_se:c_se + 1, :]
    scale = _hardsigmoid(z2)                                   # (1, Cexp) row

    # project 1x1 conv: SE gate + BN scale folded into the tiny weight (f32),
    # single bf16 cast, then one MXU matmul. Identity activation.
    w3_eff = (w3_ref[...] * scale).astype(jnp.bfloat16)        # (Cout, Cexp)
    y = jnp.dot(w3_eff, h_bf16, preferred_element_type=jnp.float32)  # (Cout, HW)
    y = y + b3
    if use_res:
        y = y + x
    out_ref[0] = y


# ------------------------------ wrapper --------------------------------------

def inverted_residual_pallas(x_nchw, p, *, use_res):
    N, Cin, H, W = x_nchw.shape
    HW = H * W
    Cexp = p["w1"].shape[0]
    Cse = p["wfc1t"].shape[1]
    Cout = p["w3"].shape[0]
    assert HW % 128 == 0, "HW must be a multiple of 128 for lane-dense blocks"
    if use_res:
        assert Cin == Cout

    x = x_nchw.reshape(N, Cin, HW)            # free reshape, no transpose

    kernel = functools.partial(_fused_kernel, inv_hw=1.0 / HW, use_res=use_res,
                               c_exp=Cexp, c_se=Cse, c_out=Cout)

    out = pl.pallas_call(
        kernel,
        out_shape=jax.ShapeDtypeStruct((N, Cout, HW), jnp.float32),
        grid_spec=pltpu.PrefetchScalarGridSpec(
            num_scalar_prefetch=0,
            grid=(N,),
            in_specs=[
                pl.BlockSpec((1, Cin, HW), lambda n: (n, 0, 0)),      # x
                pl.BlockSpec((Cexp, Cin), lambda n: (0, 0)),          # w1 (bf16)
                pl.BlockSpec((Cexp + 1, Cse), lambda n: (0, 0)),      # fc1.T|b
                pl.BlockSpec((Cse + 1, Cexp), lambda n: (0, 0)),      # fc2.T|b
                pl.BlockSpec((Cout, Cexp), lambda n: (0, 0)),         # w3 (f32)
                pl.BlockSpec((Cexp, 4), lambda n: (0, 0)),            # packed vecs
            ],
            out_specs=pl.BlockSpec((1, Cout, HW), lambda n: (n, 0, 0)),
        ),
        compiler_params=pltpu.CompilerParams(
            dimension_semantics=("parallel",)),
    )(x, p["w1"], p["wfc1t"], p["wfc2t"], p["w3"], p["vecs"])

    return out.reshape(N, Cout, H, W)          # free reshape back to NCHW


# -------------------- parameter init (deterministic) -----------------------

def init_raw_params(key, c_in, c_exp, c_out):
    c_se = _make_divisible(c_exp // 4, 8)
    ks = jax.random.split(key, 20)

    def u(k, shape, scale=0.2):
        return jax.random.uniform(k, shape, jnp.float32, -scale, scale)

    def bn(k0, k1, k2, k3, c):
        gamma = 1.0 + 0.1 * u(k0, (c,))
        beta = u(k1, (c,))
        mean = 0.1 * u(k2, (c,))
        var = 1.0 + jnp.abs(u(k3, (c,)))
        return gamma, beta, mean, var

    return {
        "conv1_w": u(ks[0], (c_exp, c_in)),              # PyTorch (O, I, 1, 1)
        "bn1": bn(ks[1], ks[2], ks[3], ks[4], c_exp),
        "dw_w": u(ks[5], (c_exp,), 0.5),                 # depthwise (C, 1, 1, 1)
        "bn2": bn(ks[6], ks[7], ks[8], ks[9], c_exp),
        "fc1_w": u(ks[10], (c_se, c_exp)),
        "fc1_b": u(ks[11], (c_se,)),
        "fc2_w": u(ks[12], (c_exp, c_se)),
        "fc2_b": u(ks[13], (c_exp,)),
        "conv3_w": u(ks[14], (c_out, c_exp)),
        "bn3": bn(ks[15], ks[16], ks[17], ks[18], c_out),
    }


def fold_params(raw):
    """All folds done in f32; bf16 casts (where any) happen exactly once."""
    def bn_fold(bn):
        g, b, m, v = bn
        s = g / jnp.sqrt(v + BN_EPS)
        return s, b - m * s

    s1, b1 = bn_fold(raw["bn1"])
    s2, b2 = bn_fold(raw["bn2"])
    s3, b3 = bn_fold(raw["bn3"])

    c_exp = raw["conv1_w"].shape[0]
    c_out = raw["conv3_w"].shape[0]

    # BN1 scale folded into the expand weight (f32 fold, single bf16 cast).
    w1 = (raw["conv1_w"] * s1[:, None]).astype(jnp.bfloat16)        # (Cexp, Cin)
    # BN3 scale folded into the project weight; kept f32 because the per-image
    # SE gate is folded into it in-kernel before a single bf16 cast.
    w3 = raw["conv3_w"] * s3[:, None]                                # (Cout, Cexp) f32

    # SE fc weights transposed, with bias appended as a trailing row.
    wfc1t = jnp.concatenate([raw["fc1_w"].T, raw["fc1_b"][None, :]], axis=0)  # (Cexp+1, Cse)
    wfc2t = jnp.concatenate([raw["fc2_w"].T, raw["fc2_b"][None, :]], axis=0)  # (Cse+1, Cexp)

    # Remaining per-channel vectors packed into one small f32 tensor:
    # columns [b1, dw scale (dw_w * s2), dw bias, b3 (zero-padded to Cexp)].
    b3_pad = jnp.zeros((c_exp,), jnp.float32).at[:c_out].set(b3)
    vecs = jnp.stack([b1, raw["dw_w"] * s2, b2, b3_pad], axis=1)     # (Cexp, 4)

    return {"w1": w1, "w3": w3, "wfc1t": wfc1t, "wfc2t": wfc2t, "vecs": vecs}


# ------------------------- pure-JAX reference -------------------------------

def reference_forward(x, raw, use_res):
    def bn(h, params):
        g, b, m, v = params
        return ((h - m[None, :, None, None]) / jnp.sqrt(v + BN_EPS)[None, :, None, None]
                * g[None, :, None, None] + b[None, :, None, None])

    h = jnp.einsum('nchw,oc->nohw', x, raw["conv1_w"])
    h = _hardswish(bn(h, raw["bn1"]))
    h = h * raw["dw_w"][None, :, None, None]             # 1x1 depthwise conv
    h = _hardswish(bn(h, raw["bn2"]))
    pooled = jnp.mean(h, axis=(2, 3))                    # (N, Cexp)
    z = _relu6(pooled @ raw["fc1_w"].T + raw["fc1_b"])
    z = z @ raw["fc2_w"].T + raw["fc2_b"]
    scale = _hardsigmoid(z)
    h = h * scale[:, :, None, None]
    y = jnp.einsum('nchw,oc->nohw', h, raw["conv3_w"])
    y = bn(y, raw["bn3"])
    if use_res:
        y = y + x
    return y


if __name__ == "__main__":
    # cnf = InvertedResidualConfig(16, 3, 64, 16, use_se=True, 'HS', stride=1, 1.0)
    c_in, c_exp, c_out = 16, 64, 16
    use_res = True  # stride == 1 and input_c == out_c

    key = jax.random.PRNGKey(0)
    kx, kp = jax.random.split(key)
    x = jax.random.normal(kx, (2, c_in, 16, 16), jnp.float32)   # NCHW

    raw = init_raw_params(kp, c_in, c_exp, c_out)
    p = fold_params(raw)

    out = inverted_residual_pallas(x, p, use_res=use_res)
    out = jax.block_until_ready(out)

    ref = reference_forward(x, raw, use_res)
    assert out.shape == (2, c_out, 16, 16), out.shape
    max_err = float(jnp.max(jnp.abs(out - ref)))
    # Tolerance loosened vs. pure-f32: the expand/project matmuls use bf16
    # operands (f32 accumulation); all folds are performed in f32.
    assert jnp.allclose(out, ref, atol=2e-2, rtol=2e-2), max_err

    print("KERNEL_OK")
</pallas_src>

<mosaic_0001>
module attributes {stable_mosaic.version = 11 : i64} {
  func.func @_fused_kernel(%arg0: i32, %arg1: memref<1x16x256xf32, #tpu.memory_space<vmem>>, %arg2: memref<64x16xbf16, #tpu.memory_space<vmem>>, %arg3: memref<65x16xf32, #tpu.memory_space<vmem>>, %arg4: memref<17x64xf32, #tpu.memory_space<vmem>>, %arg5: memref<16x64xf32, #tpu.memory_space<vmem>>, %arg6: memref<64x4xf32, #tpu.memory_space<vmem>>, %arg7: memref<1x16x256xf32, #tpu.memory_space<vmem>>) attributes {dimension_semantics = [#tpu.dimension_semantics<parallel>], iteration_bounds = array<i64: 2>, scalar_prefetch = 0 : i64, scratch_operands = 0 : i64, tpu.core_type = #tpu.core_type<tc>, window_params = [{transform_indices = @transform_0, window_bounds = array<i64: 1, 16, 256>}, {pipeline_mode = #tpu.pipeline_mode<synchronous>, transform_indices = @transform_1, window_bounds = array<i64: 64, 16>}, {pipeline_mode = #tpu.pipeline_mode<synchronous>, transform_indices = @transform_2, window_bounds = array<i64: 65, 16>}, {pipeline_mode = #tpu.pipeline_mode<synchronous>, transform_indices = @transform_3, window_bounds = array<i64: 17, 64>}, {pipeline_mode = #tpu.pipeline_mode<synchronous>, transform_indices = @transform_4, window_bounds = array<i64: 16, 64>}, {pipeline_mode = #tpu.pipeline_mode<synchronous>, transform_indices = @transform_5, window_bounds = array<i64: 64, 4>}, {transform_indices = @transform_6, window_bounds = array<i64: 1, 16, 256>}]} {
    %c0 = arith.constant 0 : index
    %c0_0 = arith.constant 0 : index
    %c0_1 = arith.constant 0 : index
    %0 = vector.load %arg1[%c0, %c0_0, %c0_1] : memref<1x16x256xf32, #tpu.memory_space<vmem>>, vector<1x16x256xf32>
    %1 = vector.shape_cast %0 : vector<1x16x256xf32> to vector<16x256xf32>
    %c0_2 = arith.constant 0 : index
    %c0_3 = arith.constant 0 : index
    %2 = vector.load %arg6[%c0_2, %c0_3] : memref<64x4xf32, #tpu.memory_space<vmem>>, vector<64x1xf32>
    %c0_4 = arith.constant 0 : index
    %c1 = arith.constant 1 : index
    %3 = vector.load %arg6[%c0_4, %c1] : memref<64x4xf32, #tpu.memory_space<vmem>>, vector<64x1xf32>
    %c0_5 = arith.constant 0 : index
    %c2 = arith.constant 2 : index
    %4 = vector.load %arg6[%c0_5, %c2] : memref<64x4xf32, #tpu.memory_space<vmem>>, vector<64x1xf32>
    %c0_6 = arith.constant 0 : index
    %c3 = arith.constant 3 : index
    %5 = vector.load %arg6[%c0_6, %c3] : memref<64x4xf32, #tpu.memory_space<vmem>>, vector<16x1xf32>
    %c0_7 = arith.constant 0 : index
    %c0_8 = arith.constant 0 : index
    %6 = vector.load %arg2[%c0_7, %c0_8] : memref<64x16xbf16, #tpu.memory_space<vmem>>, vector<64x16xbf16>
    %7 = arith.truncf %1 : vector<16x256xf32> to vector<16x256xbf16>
    %cst = arith.constant dense<0.000000e+00> : vector<64x256xf32>
    %8 = tpu.matmul %6, %7, %cst {dimension_numbers = #tpu.dot_dimension_numbers<[1], [0], [0], [1], [0, 0, 1, 1], [], []>} : vector<64x16xbf16>, vector<16x256xbf16>, vector<64x256xf32> -> vector<64x256xf32>
    %9 = vector.broadcast %2 : vector<64x1xf32> to vector<64x256xf32>
    %10 = arith.addf %8, %9 : vector<64x256xf32>
    %cst_9 = arith.constant 3.000000e+00 : f32
    %11 = vector.broadcast %cst_9 : f32 to vector<64x256xf32>
    %12 = arith.addf %10, %11 : vector<64x256xf32>
    %cst_10 = arith.constant 0.000000e+00 : f32
    %cst_11 = arith.constant 6.000000e+00 : f32
    %13 = vector.broadcast %cst_10 : f32 to vector<64x256xf32>
    %14 = arith.maximumf %13, %12 : vector<64x256xf32>
    %15 = vector.broadcast %cst_11 : f32 to vector<64x256xf32>
    %16 = arith.minimumf %15, %14 : vector<64x256xf32>
    %17 = arith.mulf %10, %16 : vector<64x256xf32>
    %cst_12 = arith.constant 0.166666672 : f32
    %18 = vector.broadcast %cst_12 : f32 to vector<64x256xf32>
    %19 = arith.mulf %17, %18 : vector<64x256xf32>
    %20 = vector.broadcast %3 : vector<64x1xf32> to vector<64x256xf32>
    %21 = arith.mulf %19, %20 : vector<64x256xf32>
    %22 = vector.broadcast %4 : vector<64x1xf32> to vector<64x256xf32>
    %23 = arith.addf %21, %22 : vector<64x256xf32>
    %cst_13 = arith.constant 3.000000e+00 : f32
    %24 = vector.broadcast %cst_13 : f32 to vector<64x256xf32>
    %25 = arith.addf %23, %24 : vector<64x256xf32>
    %cst_14 = arith.constant 0.000000e+00 : f32
    %cst_15 = arith.constant 6.000000e+00 : f32
    %26 = vector.broadcast %cst_14 : f32 to vector<64x256xf32>
    %27 = arith.maximumf %26, %25 : vector<64x256xf32>
    %28 = vector.broadcast %cst_15 : f32 to vector<64x256xf32>
    %29 = arith.minimumf %28, %27 : vector<64x256xf32>
    %30 = arith.mulf %23, %29 : vector<64x256xf32>
    %cst_16 = arith.constant 0.166666672 : f32
    %31 = vector.broadcast %cst_16 : f32 to vector<64x256xf32>
    %32 = arith.mulf %30, %31 : vector<64x256xf32>
    %33 = arith.truncf %32 : vector<64x256xf32> to vector<64x256xbf16>
    %cst_17 = arith.constant dense<0.000000e+00> : vector<64xf32>
    %34 = vector.multi_reduction <add>, %32, %cst_17 [1] : vector<64x256xf32> to vector<64xf32>
    %35 = vector.shape_cast %34 : vector<64xf32> to vector<64x1xf32>
    %cst_18 = arith.constant 3.906250e-03 : f32
    %36 = vector.broadcast %cst_18 : f32 to vector<64x1xf32>
    %37 = arith.mulf %35, %36 : vector<64x1xf32>
    %c0_19 = arith.constant 0 : index
    %c0_20 = arith.constant 0 : index
    %38 = vector.load %arg3[%c0_19, %c0_20] : memref<65x16xf32, #tpu.memory_space<vmem>>, vector<64x16xf32>
    %39 = vector.broadcast %37 : vector<64x1xf32> to vector<64x16xf32>
    %40 = arith.mulf %38, %39 : vector<64x16xf32>
    %cst_21 = arith.constant dense<0.000000e+00> : vector<16xf32>
    %41 = vector.multi_reduction <add>, %40, %cst_21 [0] : vector<64x16xf32> to vector<16xf32>
    %42 = vector.shape_cast %41 : vector<16xf32> to vector<1x16xf32>
    %c64 = arith.constant 64 : index
    %c0_22 = arith.constant 0 : index
    %43 = vector.load %arg3[%c64, %c0_22] : memref<65x16xf32, #tpu.memory_space<vmem>>, vector<1x16xf32>
    %44 = arith.addf %42, %43 : vector<1x16xf32>
    %cst_23 = arith.constant 0.000000e+00 : f32
    %cst_24 = arith.constant 6.000000e+00 : f32
    %45 = vector.broadcast %cst_23 : f32 to vector<1x16xf32>
    %46 = arith.maximumf %45, %44 : vector<1x16xf32>
    %47 = vector.broadcast %cst_24 : f32 to vector<1x16xf32>
    %48 = arith.minimumf %47, %46 : vector<1x16xf32>
    %c0_25 = arith.constant 0 : index
    %c0_26 = arith.constant 0 : index
    %49 = vector.load %arg4[%c0_25, %c0_26] : memref<17x64xf32, #tpu.memory_space<vmem>>, vector<16x64xf32>
    %cst_27 = arith.constant dense<0.000000e+00> : vector<1x64xf32>
    %50 = tpu.matmul %48, %49, %cst_27 {dimension_numbers = #tpu.dot_dimension_numbers<[1], [0], [0], [1], [0, 0, 1, 1], [], []>} : vector<1x16xf32>, vector<16x64xf32>, vector<1x64xf32> -> vector<1x64xf32>
    %c16 = arith.constant 16 : index
    %c0_28 = arith.constant 0 : index
    %51 = vector.load %arg4[%c16, %c0_28] : memref<17x64xf32, #tpu.memory_space<vmem>>, vector<1x64xf32>
    %52 = arith.addf %50, %51 : vector<1x64xf32>
    %cst_29 = arith.constant 3.000000e+00 : f32
    %53 = vector.broadcast %cst_29 : f32 to vector<1x64xf32>
    %54 = arith.addf %52, %53 : vector<1x64xf32>
    %cst_30 = arith.constant 0.000000e+00 : f32
    %cst_31 = arith.constant 6.000000e+00 : f32
    %55 = vector.broadcast %cst_30 : f32 to vector<1x64xf32>
    %56 = arith.maximumf %55, %54 : vector<1x64xf32>
    %57 = vector.broadcast %cst_31 : f32 to vector<1x64xf32>
    %58 = arith.minimumf %57, %56 : vector<1x64xf32>
    %cst_32 = arith.constant 0.166666672 : f32
    %59 = vector.broadcast %cst_32 : f32 to vector<1x64xf32>
    %60 = arith.mulf %58, %59 : vector<1x64xf32>
    %c0_33 = arith.constant 0 : index
    %c0_34 = arith.constant 0 : index
    %61 = vector.load %arg5[%c0_33, %c0_34] : memref<16x64xf32, #tpu.memory_space<vmem>>, vector<16x64xf32>
    %62 = vector.broadcast %60 : vector<1x64xf32> to vector<16x64xf32>
    %63 = arith.mulf %61, %62 : vector<16x64xf32>
    %64 = arith.truncf %63 : vector<16x64xf32> to vector<16x64xbf16>
    %cst_35 = arith.constant dense<0.000000e+00> : vector<16x256xf32>
    %65 = tpu.matmul %64, %33, %cst_35 {dimension_numbers = #tpu.dot_dimension_numbers<[1], [0], [0], [1], [0, 0, 1, 1], [], []>} : vector<16x64xbf16>, vector<64x256xbf16>, vector<16x256xf32> -> vector<16x256xf32>
    %66 = vector.broadcast %5 : vector<16x1xf32> to vector<16x256xf32>
    %67 = arith.addf %65, %66 : vector<16x256xf32>
    %68 = arith.addf %67, %1 : vector<16x256xf32>
    %c0_36 = arith.constant 0 : index
    %c0_37 = arith.constant 0 : index
    %c0_38 = arith.constant 0 : index
    %69 = vector.load %arg7[%c0_36, %c0_37, %c0_38] : memref<1x16x256xf32, #tpu.memory_space<vmem>>, vector<1x16x256xf32>
    %70 = vector.shape_cast %69 : vector<1x16x256xf32> to vector<16x256xf32>
    %71 = vector.shape_cast %68 : vector<16x256xf32> to vector<1x16x256xf32>
    tpu.vector_store %arg7[%c0_36, %c0_37, %c0_38], %71 {strides = array<i32>} : memref<1x16x256xf32, #tpu.memory_space<vmem>>, vector<1x16x256xf32>,
    return
  }
  func.func @transform_0(%arg0: i32) -> (i32, i32, i32) {
    %c0_i32 = arith.constant 0 : i32
    %c0_i32_0 = arith.constant 0 : i32
    %c0_i32_1 = arith.constant 0 : i32
    return %arg0, %c0_i32, %c0_i32_0 : i32, i32, i32
  }
  func.func @transform_1(%arg0: i32) -> (i32, i32) {
    %c0_i32 = arith.constant 0 : i32
    %c0_i32_0 = arith.constant 0 : i32
    %c0_i32_1 = arith.constant 0 : i32
    return %c0_i32, %c0_i32_0 : i32, i32
  }
  func.func @transform_2(%arg0: i32) -> (i32, i32) {
    %c0_i32 = arith.constant 0 : i32
    %c0_i32_0 = arith.constant 0 : i32
    %c0_i32_1 = arith.constant 0 : i32
    return %c0_i32, %c0_i32_0 : i32, i32
  }
  func.func @transform_3(%arg0: i32) -> (i32, i32) {
    %c0_i32 = arith.constant 0 : i32
    %c0_i32_0 = arith.constant 0 : i32
    %c0_i32_1 = arith.constant 0 : i32
    return %c0_i32, %c0_i32_0 : i32, i32
  }
  func.func @transform_4(%arg0: i32) -> (i32, i32) {
    %c0_i32 = arith.constant 0 : i32
    %c0_i32_0 = arith.constant 0 : i32
    %c0_i32_1 = arith.constant 0 : i32
    return %c0_i32, %c0_i32_0 : i32, i32
  }
  func.func @transform_5(%arg0: i32) -> (i32, i32) {
    %c0_i32 = arith.constant 0 : i32
    %c0_i32_0 = arith.constant 0 : i32
    %c0_i32_1 = arith.constant 0 : i32
    return %c0_i32, %c0_i32_0 : i32, i32
  }
  func.func @transform_6(%arg0: i32) -> (i32, i32, i32) {
    %c0_i32 = arith.constant 0 : i32
    %c0_i32_0 = arith.constant 0 : i32
    %c0_i32_1 = arith.constant 0 : i32
    return %arg0, %c0_i32, %c0_i32_0 : i32, i32, i32
  }
}

</mosaic_0001>

<bundles_post_ra>
// kernel: tpu_custom_call.1
= control target key start
LH: loop header
LB: loop body
LE: loop exit
PB: predicated region body
PF: predicated region fallthrough
CT: control target
= control target key end

     0   :  { %11 = vsyncpa [#allocation3], 0  ;;  %s1557_s0 = inlined_call_operand.vmem [shape: f32[2,16,256], index: 0, kind: input, shape index: {}]   ;;  %s1558_s1 = inlined_call_operand.vmem [shape: bf16[64,16], index: 1, kind: input, shape index: {}]   ;;  %s1559_s2 = inlined_call_operand.vmem [shape: f32[65,16], index: 2, kind: input, shape index: {}]   ;;  %s1560_s3 = inlined_call_operand.vmem [shape: f32[17,64], index: 3, kind: input, shape index: {}]   ;;  %s1561_s4 = inlined_call_operand.vmem [shape: f32[16,64], index: 4, kind: input, shape index: {}]   ;;  %s1562_s5 = inlined_call_operand.vmem [shape: f32[64,4], index: 5, kind: input, shape index: {}]   ;;  %s1563_s6 = inlined_call_operand.hbm [shape: f32[2,16,256], index: 6, kind: output, shape index: {}]  }
   0x1   :  { %13 = vsyncpa [#allocation3 + $0x1], 0  ;;  %s1185_s21 = smov 0   ;;  %s1187_s22 = smov 0  }
   0x2   :  { %s1189_s23 = smov 0   ;;  %s1191_s24 = smov 0  }
   0x3 LB: > { %s1206_s25 = sadd.s32 4294967295, %s1139_s24   ;;  %s984_s26 = sadd.s32 4294967294, %s1139_s24   ;;  %s1139_s24 = sphi %s1191_s24, %s1569_s24   ;;  %s1135_s23 = sphi %s1189_s23, %s1568_s23   ;;  %s1131_s22 = sphi %s1187_s22, %s1567_s22   ;;  %s1127_s21 = sphi %s1185_s21, %s1566_s21  }
   0x4   : > { %s1210_s27 = sadd.s32 1, %s1139_s24   ;;  %s157_s28 = sadd.s32 1, %s1135_s23 }
   0x5   : > { %s154_s29 = ssub.s32 %s1139_s24, %s1210_s27  ;;  %p167_p0 = scmp.ne.s32.totalorder %s1135_s23, %s1131_s22 }
   0x6   : > { %p155_p1 = scmp.eq.s32.totalorder %s154_s29, 0  ;;  %p168_p2 = scmp.eq.s32.totalorder %s1206_s25, 1 }
   0x7   : > { %p173_p3 = scmp.ne.s32.totalorder %s1131_s22, %s1127_s21  ;;  %p174_p4 = scmp.eq.s32.totalorder %s984_s26, 1 }
   0x8   : > { %s1221_s30 = scalar_select %p155_p1, %s1135_s23, %s157_s28  }
   0x9   : > { %p1223_p5 = por %p168_p2, %p167_p0  ;;  %p1227_p6 = por %p174_p4, %p173_p3 }
   0xa   : > { %p987_p7 = scmp.ge.s32.totalorder %s1139_s24, 1  ;;  %p215_p8 = scmp.lt.s32.totalorder %s1139_s24, 3 }
   0xc   : > { %p216_p9 = pnand %p987_p7, %p215_p8 }
   0xd   : > { %p245_p10 = scmp.lt.s32.totalorder (!%p216_p9), %s1206_s25, 1  ;;  %s242_s26 = sand.u32 (!%p216_p9), 1, %s1131_s22  }
   0xe   : > { %219 = sbr.rel (%p216_p9) target bundleno = 881 (0x371), region = 44  ;;  %s988_s28 = sshll.u32 (!%p216_p9), %s242_s26, 5 }
   0xf   : > { %s244_s29 = scalar_lea.vmem (!%p216_p9), [#allocation2], %s988_s28  ;;  %s1517_s14 = scalar_lea.sflag (!%p216_p9), [#allocation3], %s242_s26 }
  0x13   : > { %v1141_v0 = vmov 0   ;;  %s246_s9 = scalar_select %p245_p10, %s1206_s25, 1  ;;  %v257_v1 = vld [vmem:[%s1562_s5 + $0x10] sm:$0xff]  ;;  %v258_v2 = vld [vmem:[%s1562_s5 + $0x18] sm:$0xff]  ;;  %v1250_v3 = vld [vmem:[%s1562_s5] sm:$0xff]  ;;  %vm333_vm0 = vcmask 130048  }
  0x14   : > { %378 = vmatprep.mubr.bf16.mxu0 %v1141_v0  ;;  %1066 = vset.pattern.permute.xlu1 %v1141_v0  ;;  %v1266_v9 = vld [vmem:[%s1562_s5 + $0x8] sm:$0xff]  ;;  %v1075_v11 = vld [vmem:[%s1558_s1] sm:$0xff]   ;;  %v262_v14 = vld [vmem:[%s1562_s5 + $0x38] sm:$0xff]  ;;  %v1142_v17 = vmov 1   ;;  %v1143_v19 = vmov 2   ;;  %v1144_v21 = vmov 0.0  }
  0x15   : > { %1065 = vset.pattern.permute.xlu0 %v1141_v0  ;;  %s1006_s10 = sshll.u32 %s246_s9, 5  ;;  %285 = vperm.xlu1 %1066, %v257_v1   ;;  %v260_v12 = vld [vmem:[%s1562_s5 + $0x28] sm:$0xff]  ;;  %v259_v13 = vld [vmem:[%s1562_s5 + $0x20] sm:$0xff]  ;;  %v261_v15 = vld [vmem:[%s1562_s5 + $0x30] sm:$0xff]  ;;  %vm1145_vm1 = vmmov 0   ;;  %vm853_vm2 = vcmask 523264  }
  0x16   : > { %s249_s15 = scalar_lea.vmem %s1557_s0, %s1006_s10  ;;  %275 = vperm.xlu0 %1065, %v1250_v3   ;;  %v1076_v16 = vld [vmem:[%s1558_s1 + $0x8] sm:$0xff]   ;;  %v1077_v18 = vld [vmem:[%s1558_s1 + $0x10] sm:$0xff]   ;;  %v1078_v20 = vld [vmem:[%s1558_s1 + $0x18] sm:$0xff]   ;;  %1011 = vmatprep.subr.mxu1 %v1144_v21  ;;  %s922_s9 = sshll.u32 %s244_s29, 4  ;;  %s1509_s9 = int_to_ptr.vmem [resolvable:$true] %s922_s9 }
  0x17   : > { %v1252_v4 = vld [vmem:[%s249_s15 + $0x8] sm:$0xff]  ;;  %v1254_v5 = vld [vmem:[%s249_s15 + $0x18] sm:$0xff]  ;;  %v1256_v6 = vld [vmem:[%s249_s15] sm:$0xff]  ;;  %1015 = vmatprep.mubr.msk.f32.mxu1 %vm1145_vm1, %v1144_v21  ;;  %s1007_s10 = sshll.u32 %s1206_s25, 9  ;;  %s1079_s25 = scalar_lea.vmem %s1509_s9, 512 }
  0x18   : > { %v272_v7 = vpack.c.bf16 %v1254_v5, %v1252_v4  ;;  %v1261_v8 = vld [vmem:[%s249_s15 + $0x10] sm:$0xff]  ;;  %v757_v22 = vld [vmem:[%s1560_s3 + $0x8] sm:$0xff]  ;;  %v756_v23 = vld [vmem:[%s1560_s3] sm:$0xff]  ;;  %s1515_s13 = scalar_lea.hbm %s1563_s6, %s1007_s10  ;;  %p1080_p11 = scmp.ne.s32.totalorder %s1509_s9, %s1079_s25 }
  0x19   : > { %v271_v10 = vpack.c.bf16 %v1261_v8, %v1256_v6  ;;  %290 = vperm.xlu1 %1066, %v258_v2   ;;  %1012 = vmatpush3.msra.mxu1 %v757_v22  ;;  %s1147_s15 = smov [#allocation2]  }
  0x1a   : > { %360 = vmatprep.subr.bf16.mxu0 %v272_v7  ;;  %280 = vperm.xlu0 %1065, %v1266_v9   ;;  %p1081_p12 = pnand %p1080_p11, %p1223_p5  ;;  %s1083_s16 = sshll.u32 %s1147_s15, 4  ;;  %s1084_s16 = int_to_ptr.vmem [resolvable:$false] %s1083_s16 }
  0x1b   : > { %361 = vmatpush1.bf16.msra.mxu0 %v271_v10  ;;  %1013 = vmatprep.subr.mxu1 %v1144_v21  ;;  %s1085_s17 = scalar_lea.vmem %s1084_s16, 1024  ;;  %p1086_p0 = scmp.lt.s32.totalorder %s1509_s9, %s1084_s16 }
  0x1c   : > { %1014 = vmatpush3.msra.mxu1 %v756_v23  ;;  %p1082_p13 = pneg %p1081_p12  ;;  %p1087_p1 = scmp.lt.s32.totalorder %s1085_s17, %s1079_s25 }
  0x1d   : > { %300 = vperm.xlu1 %1066, %v260_v12  }
  0x1e   : > { %995 = vmatmul.mubr.msk.bf16.vlgmr.msra.gmra.mxu0 %vm333_vm0, %v1075_v11  ;;  %295 = vperm.xlu0 %1065, %v259_v13   ;;  %p1088_p2 = por %p1087_p1, %p1086_p0 }
  0x1f   : > { %388 = vmatprep.mubr.bf16.mxu0 %v1141_v0 }
  0x20   : > { %p1089_p3 = pnand %p1088_p2, %p1082_p13 }
  0x21   : > { %310 = vperm.xlu1 %1066, %v262_v14  }
  0x22   : > { %305 = vperm.xlu0 %1065, %v261_v15  }
  0x25   : > { %1068 = vset.pattern.permute.xlu1 %v1142_v17 }
  0x26   : > { %996 = vmatmul.mubr.msk.bf16.gmra.mxu0 %vm333_vm0, %v1076_v16  ;;  %504 = vperm.xlu1 %1068, %v1266_v9  }
  0x27   : > { %398 = vmatprep.mubr.bf16.mxu0 %v1141_v0  ;;  %1067 = vset.pattern.permute.xlu0 %v1142_v17 }
  0x28   : > { %500 = vperm.xlu0 %1067, %v1250_v3  }
  0x2a   : > { %508 = vperm.xlu1 %1068, %v257_v1  }
  0x2c   : > { %1069 = vset.pattern.permute.xlu0 %v1143_v19 }
  0x2d   : > { %548 = vperm.xlu0 %1069, %v1250_v3  }
  0x2e   : > { %997 = vmatmul.mubr.msk.bf16.gmra.mxu0 %vm333_vm0, %v1077_v18  ;;  %1070 = vset.pattern.permute.xlu1 %v1143_v19 }
  0x2f   : > { %408 = vmatprep.mubr.bf16.mxu0 %v1141_v0  ;;  %552 = vperm.xlu1 %1070, %v1266_v9  }
  0x31   : > { %556 = vperm.xlu0 %1069, %v257_v1  }
  0x33   : > { %1071 = vset.pattern.permute.xlu1 %v1142_v17 }
  0x34   : > { %512 = vperm.xlu1 %1071, %v258_v2  }
  0x35   : > { %560 = vperm.xlu0 %1069, %v258_v2  }
  0x36   : > { %998 = vmatmul.mubr.msk.bf16.gmra.mxu0 %vm333_vm0, %v1078_v20 }
  0x38   : > { %516 = vperm.xlu1 %1071, %v259_v13  }
  0x39   : > { %564 = vperm.xlu0 %1069, %v259_v13  }
  0x3c   : > { %520 = vperm.xlu1 %1071, %v260_v12  }
  0x3d   : > { %568 = vperm.xlu0 %1069, %v260_v12  }
  0x40   : > { %524 = vperm.xlu1 %1071, %v261_v15  }
  0x41   : > { %572 = vperm.xlu0 %1069, %v261_v15  }
  0x44   : > { %528 = vperm.xlu1 %1071, %v262_v14  }
  0x48   : > { %1072 = vset.pattern.permute.xlu1 %v1143_v19 }
  0x49   : > { %576 = vperm.xlu1 %1072, %v262_v14  }
  0x90   : > { %v286_v24 = vpop.permute.xlu1 %285 }
  0x91   : > { %v276_v27 = vpop.permute.xlu0 %275 }
  0x94   : > { %v291_v25 = vpop.permute.xlu1 %290 }
  0x95   : > { %v281_v29 = vpop.permute.xlu0 %280 }
  0x98   : > { %v1314_v26 = vpop.permute.xlu1 %300 }
  0x99   : > { %v1320_v31 = vpop.permute.xlu0 %295 }
  0x9c   : > { %v1316_v28 = vpop.permute.xlu1 %310 }
  0x9d   : > { %v1324_v35 = vpop.permute.xlu0 %305 }
  0xa1   : > { %v1318_v30 = vpop.permute.xlu1 %504 }
  0xa3   : > { %v501_v49 = vpop.permute.xlu0 %500 }
  0xa5   : > { %v1322_v33 = vpop.permute.xlu1 %508 }
  0xa8   : > { %v549_v12 = vpop.permute.xlu0 %548 }
  0xaa   : > { %v1326_v46 = vpop.permute.xlu1 %552 }
  0xaf   : > { %v1328_v11 = vpop.permute.xlu1 %512 }
  0xde   : > { %v380_v32 = vpop.f32.mrf.mxu0 }
  0xdf   : > { %v381_v34 = vadd.f32 %v380_v32, %v276_v27 }
  0xe0   : > { %v382_v36 = vpop.f32.mrf.mxu0 }
  0xe1   : > { %v419_v37 = vadd.f32 3.0, %v381_v34  ;;  %v383_v38 = vadd.f32 %v382_v36, %v276_v27 }
  0xe2   : > { %v384_v39 = vpop.f32.mrf.mxu0 }
  0xe3   : > { %v435_v40 = vmax.f32 %v419_v37, 0.0  ;;  %v420_v41 = vadd.f32 3.0, %v383_v38  ;;  %v385_v42 = vadd.f32 %v384_v39, %v281_v29 }
  0xe4   : > { %v386_v43 = vpop.f32.mrf.mxu0 }
  0xe5   : > { %v451_v44 = vmin.f32 %v435_v40, 6.0  ;;  %v436_v45 = vmax.f32 %v420_v41, 0.0  ;;  %v421_v47 = vadd.f32 3.0, %v385_v42  ;;  %v387_v48 = vadd.f32 %v386_v43, %v281_v29 }
  0xe6   : > { %v390_v50 = vpop.f32.mrf.mxu0 }
  0xe7   : > { %v467_v51 = vmul.f32 %v451_v44, %v381_v34  ;;  %v452_v52 = vmin.f32 %v436_v45, 6.0  ;;  %v437_v53 = vmax.f32 %v421_v47, 0.0  ;;  %v422_v54 = vadd.f32 3.0, %v387_v48  ;;  %v1334_v44 = vpop.permute.xlu1 %516 }
  0xe8   : > { %v391_v55 = vadd.f32 %v390_v50, %v286_v24  ;;  %v392_v56 = vpop.f32.mrf.mxu0 }
  0xe9   : > { %v483_v57 = vmul.f32 0.16666667, %v467_v51  ;;  %v468_v58 = vmul.f32 %v452_v52, %v383_v38  ;;  %v453_v59 = vmin.f32 %v437_v53, 6.0  ;;  %v438_v60 = vmax.f32 %v422_v54, 0.0 }
  0xea   : > { %v423_v61 = vadd.f32 3.0, %v391_v55  ;;  %v393_v62 = vadd.f32 %v392_v56, %v286_v24  ;;  %v394_v63 = vpop.f32.mrf.mxu0 }
  0xeb   : > { %v531_v1 = vmul.f32 %v501_v49, %v483_v57  ;;  %v484_v2 = vmul.f32 0.16666667, %v468_v58  ;;  %v469_v7 = vmul.f32 %v453_v59, %v385_v42  ;;  %v454_v10 = vmin.f32 %v438_v60, 6.0 }
  0xec   : > { %v439_v13 = vmax.f32 %v423_v61, 0.0  ;;  %v424_v14 = vadd.f32 3.0, %v393_v62  ;;  %v395_v15 = vadd.f32 %v394_v63, %v291_v25  ;;  %v396_v16 = vpop.f32.mrf.mxu0 }
  0xed   : > { %v579_v17 = vadd.f32 %v549_v12, %v531_v1  ;;  %v485_v18 = vmul.f32 0.16666667, %v469_v7  ;;  %v470_v19 = vmul.f32 %v454_v10, %v387_v48  ;;  %v397_v27 = vadd.f32 %v396_v16, %v291_v25 }
  0xee   : > { %v455_v20 = vmin.f32 %v439_v13, 6.0  ;;  %v440_v22 = vmax.f32 %v424_v14, 0.0  ;;  %v425_v23 = vadd.f32 3.0, %v395_v15  ;;  %v400_v24 = vpop.f32.mrf.mxu0  ;;  %v532_v32 = vmul.f32 %v501_v49, %v484_v2  ;;  %v521_v14 = vpop.permute.xlu1 %520 }
  0xef   : > { %v595_v29 = vadd.f32 3.0, %v579_v17  ;;  %v486_v34 = vmul.f32 0.16666667, %v470_v19  ;;  %v401_v36 = vadd.f32 %v400_v24, %v1320_v31  ;;  %v426_v40 = vadd.f32 3.0, %v397_v27 }
  0xf0   : > { %v471_v37 = vmul.f32 %v455_v20, %v391_v55  ;;  %v456_v38 = vmin.f32 %v440_v22, 6.0  ;;  %v441_v39 = vmax.f32 %v425_v23, 0.0  ;;  %v402_v41 = vpop.f32.mrf.mxu0  ;;  %v1332_v43 = vmul.f32 %v1318_v30, %v485_v18 }
  0xf1   : > { %v611_v42 = vmax.f32 %v595_v29, 0.0  ;;  %v427_v45 = vadd.f32 3.0, %v401_v36  ;;  %v403_v25 = vadd.f32 %v402_v41, %v1320_v31  ;;  %v442_v50 = vmax.f32 %v426_v40, 0.0  ;;  %v557_v40 = vpop.permute.xlu0 %556 }
  0xf2   : > { %v487_v47 = vmul.f32 0.16666667, %v471_v37  ;;  %v472_v48 = vmul.f32 %v456_v38, %v393_v62  ;;  %v457_v49 = vmin.f32 %v441_v39, 6.0  ;;  %v404_v51 = vpop.f32.mrf.mxu0  ;;  %v1339_v56 = vmul.f32 %v1318_v30, %v486_v34 }
  0xf3   : > { %v627_v52 = vmin.f32 %v611_v42, 6.0  ;;  %v443_v53 = vmax.f32 %v427_v45, 0.0  ;;  %v428_v54 = vadd.f32 3.0, %v403_v25  ;;  %v405_v55 = vadd.f32 %v404_v51, %v1314_v26 }
  0xf4   : > { %v488_v57 = vmul.f32 0.16666667, %v472_v48  ;;  %v473_v58 = vmul.f32 %v457_v49, %v395_v15  ;;  %v458_v59 = vmin.f32 %v442_v50, 6.0  ;;  %v406_v60 = vpop.f32.mrf.mxu0  ;;  %v1342_v61 = vmul.f32 %v1322_v33, %v487_v47  ;;  %v1354_v50 = vpop.permute.xlu1 %524 }
  0xf5   : > { %v459_v31 = vmin.f32 %v443_v53, 6.0  ;;  %v444_v62 = vmax.f32 %v428_v54, 0.0  ;;  %v429_v63 = vadd.f32 3.0, %v405_v55  ;;  %v643_v1 = vmul.f32 %v627_v52, %v579_v17 }
  0xf6   : > { %v489_v2 = vmul.f32 0.16666667, %v473_v58  ;;  %v474_v7 = vmul.f32 %v458_v59, %v397_v27  ;;  %v407_v10 = vadd.f32 %v406_v60, %v1314_v26  ;;  %v410_v13 = vpop.f32.mrf.mxu0  ;;  %v536_v19 = vmul.f32 %v1322_v33, %v488_v57 }
  0xf7   : > { %v475_v16 = vmul.f32 %v459_v31, %v401_v36  ;;  %v460_v30 = vmin.f32 %v444_v62, 6.0  ;;  %v445_v18 = vmax.f32 %v429_v63, 0.0  ;;  %v411_v15 = vadd.f32 %v410_v13, %v1324_v35 }
  0xf8   : > { %v490_v20 = vmul.f32 0.16666667, %v474_v7  ;;  %v430_v22 = vadd.f32 3.0, %v407_v10  ;;  %v412_v23 = vpop.f32.mrf.mxu0  ;;  %v580_v24 = vadd.f32 %v549_v12, %v532_v32  ;;  %v537_v27 = vmul.f32 %v1328_v11, %v489_v2  ;;  %v561_v7 = vpop.permute.xlu0 %560 }
  0xf9   : > { %v491_v29 = vmul.f32 0.16666667, %v475_v16  ;;  %v476_v34 = vmul.f32 %v460_v30, %v403_v25  ;;  %v461_v17 = vmin.f32 %v445_v18, 6.0  ;;  %v431_v37 = vadd.f32 3.0, %v411_v15 }
  0xfa   : > { %v446_v26 = vmax.f32 %v430_v22, 0.0  ;;  %v413_v38 = vadd.f32 %v412_v23, %v1324_v35  ;;  %v414_v36 = vpop.f32.mrf.mxu0  ;;  %v596_v39 = vadd.f32 3.0, %v580_v24  ;;  %v538_v41 = vmul.f32 %v1328_v11, %v490_v20  ;;  %v529_v22 = vpop.permute.xlu1 %528 }
  0xfb   : > { %v492_v42 = vmul.f32 0.16666667, %v476_v34  ;;  %v477_v33 = vmul.f32 %v461_v17, %v405_v55  ;;  %v447_v45 = vmax.f32 %v431_v37, 0.0  ;;  %v415_v12 = vadd.f32 %v414_v36, %v1316_v28 }
  0xfc   : > { %v462_v47 = vmin.f32 %v446_v26, 6.0  ;;  %v432_v48 = vadd.f32 3.0, %v413_v38  ;;  %v416_v32 = vpop.f32.mrf.mxu0  ;;  %v612_v25 = vmax.f32 %v596_v39, 0.0  ;;  %v1352_v49 = vmul.f32 %v1334_v44, %v491_v29 }
  0xfd   : > { %v493_v35 = vmul.f32 0.16666667, %v477_v33  ;;  %v463_v51 = vmin.f32 %v447_v45, 6.0  ;;  %v417_v52 = vadd.f32 %v416_v32, %v1316_v28  ;;  %v433_v54 = vadd.f32 3.0, %v415_v12 }
  0xfe   : > { %v478_v53 = vmul.f32 %v462_v47, %v407_v10  ;;  %v448_v11 = vmax.f32 %v432_v48, 0.0  ;;  %v628_v55 = vmin.f32 %v612_v25, 6.0  ;;  %v1358_v57 = vmul.f32 %v1334_v44, %v492_v42  ;;  %v565_v42 = vpop.permute.xlu0 %564 }
  0xff   : > { %v1360_v58 = vmul.f32 %v521_v14, %v493_v35  ;;  %v479_v59 = vmul.f32 %v463_v51, %v411_v15  ;;  %v434_v60 = vadd.f32 3.0, %v417_v52  ;;  %v449_v63 = vmax.f32 %v433_v54, 0.0 }
 0x100   : > { %v494_v31 = vmul.f32 0.16666667, %v478_v53  ;;  %v464_v62 = vmin.f32 %v448_v11, 6.0  ;;  %v644_v2 = vmul.f32 %v628_v55, %v580_v24  ;;  %v581_v28 = vadd.f32 %v1326_v46, %v1332_v43 }
 0x101   : > { %v495_v13 = vmul.f32 0.16666667, %v479_v59  ;;  %v450_v16 = vmax.f32 %v434_v60, 0.0  ;;  %v582_v10 = vadd.f32 %v1326_v46, %v1339_v56  ;;  %v465_v44 = vmin.f32 %v449_v63, 6.0 }
 0x102   : > { %v480_v30 = vmul.f32 %v464_v62, %v413_v38  ;;  %v1366_v18 = vmul.f32 0.16666667, %v643_v1  ;;  %v1368_v20 = vmul.f32 0.16666667, %v644_v2  ;;  %v1370_v15 = vmul.f32 %v521_v14, %v494_v31 }
 0x103   : > { %v466_v23 = vmin.f32 %v450_v16, 6.0  ;;  %v597_v24 = vadd.f32 3.0, %v581_v28  ;;  %v598_v29 = vadd.f32 3.0, %v582_v10  ;;  %v1373_v34 = vmul.f32 %v1354_v50, %v495_v13 }
 0x104   : > { %v481_v17 = vmul.f32 %v465_v44, %v415_v12  ;;  %v683_v43 = vadd.f32 %v1368_v20, %v1366_v18  ;;  %v583_v46 = vadd.f32 %v557_v40, %v1342_v61  ;;  %v584_v26 = vadd.f32 %v557_v40, %v536_v19  ;;  %v577_v12 = vpop.permute.xlu1 %576 }
 0x105   : > { %v482_v56 = vmul.f32 %v466_v23, %v417_v52  ;;  %v613_v1 = vmax.f32 %v597_v24, 0.0  ;;  %v614_v37 = vmax.f32 %v598_v29, 0.0  ;;  %v496_v38 = vmul.f32 0.16666667, %v480_v30 }
 0x106   : > { %v497_v14 = vmul.f32 0.16666667, %v481_v17  ;;  %684 = vadd.xlane.f32.xlu0 %v683_v43  ;;  %v599_v36 = vadd.f32 3.0, %v583_v46  ;;  %v585_v39 = vadd.f32 %v561_v7, %v537_v27  ;;  %v600_v48 = vadd.f32 3.0, %v584_v26 }
 0x107   : > { %v498_v33 = vmul.f32 0.16666667, %v482_v56  ;;  %v629_v45 = vmin.f32 %v613_v1, 6.0  ;;  %v630_v47 = vmin.f32 %v614_v37, 6.0  ;;  %v586_v35 = vadd.f32 %v561_v7, %v538_v41  ;;  %v569_v41 = vpop.permute.xlu0 %568 }
 0x108   : > { %v615_v32 = vmax.f32 %v599_v36, 0.0  ;;  %v545_v25 = vmul.f32 %v529_v22, %v497_v14  ;;  %v601_v51 = vadd.f32 3.0, %v585_v39  ;;  %v616_v53 = vmax.f32 %v600_v48, 0.0 }
 0x109   : > { %v645_v61 = vmul.f32 %v629_v45, %v581_v28  ;;  %v646_v52 = vmul.f32 %v630_v47, %v582_v10  ;;  %v546_v11 = vmul.f32 %v529_v22, %v498_v33  ;;  %v602_v54 = vadd.f32 3.0, %v586_v35 }
 0x10a   : > { %v631_v19 = vmin.f32 %v615_v32, 6.0  ;;  %v593_v40 = vadd.f32 %v577_v12, %v545_v25  ;;  %v617_v55 = vmax.f32 %v601_v51, 0.0  ;;  %v632_v60 = vmin.f32 %v616_v53, 6.0 }
 0x10b   : > { %v1378_v59 = vmul.f32 0.16666667, %v645_v61  ;;  %v1380_v27 = vmul.f32 0.16666667, %v646_v52  ;;  %v594_v31 = vadd.f32 %v577_v12, %v546_v11  ;;  %v618_v2 = vmax.f32 %v602_v54, 0.0 }
 0x10c   : > { %v647_v62 = vmul.f32 %v631_v19, %v583_v46  ;;  %v609_v63 = vadd.f32 3.0, %v593_v40  ;;  %v633_v13 = vmin.f32 %v617_v55, 6.0  ;;  %v648_v28 = vmul.f32 %v632_v60, %v584_v26 }
 0x10d   : > { %v686_v7 = vadd.f32 %v1380_v27, %v1378_v59  ;;  %v675_v16 = vpack.c.bf16 %v1378_v59, %v1366_v18  ;;  %v610_v10 = vadd.f32 3.0, %v594_v31  ;;  %v634_v22 = vmin.f32 %v618_v2, 6.0 }
 0x10e   : > { %v1386_v30 = vmul.f32 0.16666667, %v647_v62  ;;  %v625_v44 = vmax.f32 %v609_v63, 0.0  ;;  %v649_v23 = vmul.f32 %v633_v13, %v585_v39  ;;  %v1388_v24 = vmul.f32 0.16666667, %v648_v28 }
 0x10f   : > { %687 = vadd.xlane.f32.xlu1 %v686_v7  ;;  %v626_v29 = vmax.f32 %v610_v10, 0.0  ;;  %v587_v17 = vadd.f32 %v565_v42, %v1352_v49  ;;  %v588_v43 = vadd.f32 %v565_v42, %v1358_v57  ;;  %v544_v46 = vmul.f32 %v1354_v50, %v496_v38  ;;  %v573_v42 = vpop.permute.xlu0 %572 }
 0x110   : > { %v650_v56 = vmul.f32 %v634_v22, %v586_v35  ;;  %v1393_v1 = vmul.f32 0.16666667, %v649_v23  ;;  %v589_v37 = vadd.f32 %v569_v41, %v1360_v58  ;;  %v689_v26 = vadd.f32 %v1388_v24, %v1386_v30 }
 0x111   : > { %v603_v14 = vadd.f32 3.0, %v587_v17  ;;  %v604_v36 = vadd.f32 3.0, %v588_v43  ;;  %v642_v39 = vmin.f32 %v626_v29, 6.0  ;;  %v590_v57 = vadd.f32 %v569_v41, %v1370_v15 }
 0x112   : > { %v1398_v33 = vmul.f32 0.16666667, %v650_v56  ;;  %v677_v49 = vpack.c.bf16 %v1393_v1, %v1386_v30  ;;  %690 = vadd.xlane.f32.xlu0 %v689_v26  ;;  %v641_v50 = vmin.f32 %v625_v44, 6.0  ;;  %v605_v47 = vadd.f32 3.0, %v589_v37  ;;  %v758_v30 = vld [vmem:[%s1560_s3 + $0x10] sm:$0x1] }
 0x113   : > { %v619_v38 = vmax.f32 %v603_v14, 0.0  ;;  %v620_v45 = vmax.f32 %v604_v36, 0.0  ;;  %v606_v48 = vadd.f32 3.0, %v590_v57  ;;  %v591_v12 = vadd.f32 %v573_v42, %v1373_v34 }
 0x114   : > { %v692_v58 = vadd.f32 %v1398_v33, %v1393_v1  ;;  %v592_v32 = vadd.f32 %v573_v42, %v544_v46  ;;  %v621_v51 = vmax.f32 %v605_v47, 0.0  ;;  %v658_v61 = vmul.f32 %v642_v39, %v594_v31 }
 0x115   : > { %v635_v25 = vmin.f32 %v619_v38, 6.0  ;;  %v636_v35 = vmin.f32 %v620_v45, 6.0  ;;  %v622_v52 = vmax.f32 %v606_v48, 0.0  ;;  %v607_v53 = vadd.f32 3.0, %v591_v12 }
 0x116   : > { %v608_v15 = vadd.f32 3.0, %v592_v32  ;;  %693 = vadd.xlane.f32.xlu0 %v692_v58  ;;  %v637_v54 = vmin.f32 %v621_v51, 6.0  ;;  %v678_v55 = vpack.c.bf16 %v1398_v33, %v1388_v24  ;;  %v657_v60 = vmul.f32 %v641_v50, %v593_v40  ;;  %v716_v58 = vld [vmem:[%s1559_s2 + $0x8] sm:$0xff]  ;;  %v718_v51 = vld [vmem:[%s1559_s2 + $0x18] sm:$0xff] }
 0x117   : > { %v651_v11 = vmul.f32 %v635_v25, %v587_v17  ;;  %v652_v19 = vmul.f32 %v636_v35, %v588_v43  ;;  %v638_v62 = vmin.f32 %v622_v52, 6.0  ;;  %v623_v63 = vmax.f32 %v607_v53, 0.0  ;;  %v717_v25 = vld [vmem:[%s1559_s2 + $0x10] sm:$0xff] }
 0x118   : > { %v624_v2 = vmax.f32 %v608_v15, 0.0  ;;  %v653_v41 = vmul.f32 %v637_v54, %v589_v37  ;;  %v676_v31 = vpack.c.bf16 %v1380_v27, %v1368_v20  ;;  %v674_v44 = vmul.f32 0.16666667, %v658_v61 }
 0x119   : > { %v1408_v34 = vmul.f32 0.16666667, %v651_v11  ;;  %v1410_v13 = vmul.f32 0.16666667, %v652_v19  ;;  %v654_v7 = vmul.f32 %v638_v62, %v590_v57  ;;  %v639_v28 = vmin.f32 %v623_v63, 6.0 }
 0x11a   : > { %v640_v10 = vmin.f32 %v624_v2, 6.0  ;;  %v1416_v23 = vmul.f32 0.16666667, %v653_v41  ;;  %v1420_v43 = vmul.f32 0.16666667, %v657_v60  ;;  %v719_v60 = vld [vmem:[%s1559_s2 + $0x20] sm:$0xff]  ;;  %v838_v24 = vlaneseq }
 0x11b   : > { %v695_v22 = vadd.f32 %v1410_v13, %v1408_v34  ;;  %v1418_v40 = vmul.f32 0.16666667, %v654_v7  ;;  %v655_v29 = vmul.f32 %v639_v28, %v591_v12 }
 0x11c   : > { %v656_v17 = vmul.f32 %v640_v10, %v592_v32  ;;  %v679_v46 = vpack.c.bf16 %v1416_v23, %v1408_v34  ;;  %v704_v42 = vadd.f32 %v674_v44, %v1420_v43  ;;  %v715_v32 = vld [vmem:[%s1559_s2] sm:$0xff]  ;;  %v720_v10 = vld [vmem:[%s1559_s2 + $0x28] sm:$0xff] }
 0x11d   : > { %696 = vadd.xlane.f32.xlu1 %v695_v22  ;;  %v698_v56 = vadd.f32 %v1418_v40, %v1416_v23  ;;  %v1426_v37 = vmul.f32 0.16666667, %v655_v29  ;;  %v680_v14 = vpack.c.bf16 %v1418_v40, %v1410_v13 }
 0x11e   : > { %v672_v26 = vmul.f32 0.16666667, %v656_v17 }
 0x11f   : > { %699 = vadd.xlane.f32.xlu0 %v698_v56  ;;  %v681_v57 = vpack.c.bf16 %v1420_v43, %v1426_v37  ;;  %v721_v56 = vld [vmem:[%s1559_s2 + $0x30] sm:$0xff] }
 0x120   : > { %v701_v36 = vadd.f32 %v672_v26, %v1426_v37  ;;  %v682_v39 = vpack.c.bf16 %v674_v44, %v672_v26 }
 0x122   : > { %702 = vadd.xlane.f32.xlu1 %v701_v36  ;;  %865 = vmatprep.subr.bf16.mxu1 %v682_v39 }
 0x123   : > { %705 = vadd.xlane.f32.xlu0 %v704_v42 }
 0x18f   : > { %v685_v50 = vpop.xlane.xlu0 %684 }
 0x190   : > { %v707_v48 = vmul.f32 0.00390625, %v685_v50  ;;  %v722_v50 = vld [vmem:[%s1559_s2 + $0x38] sm:$0xff] }
 0x192   : > { %v723_v52 = vmul.f32 %v715_v32, %v707_v48 }
 0x194   : > { %v731_v19 = vsel %vm333_vm0, %v723_v52, 0.0 }
 0x198   : > { %v688_v38 = vpop.xlane.xlu1 %687 }
 0x199   : > { %v708_v45 = vmul.f32 0.00390625, %v688_v38 }
 0x19b   : > { %v691_v47 = vpop.xlane.xlu0 %690  ;;  %v724_v35 = vmul.f32 %v716_v58, %v708_v45 }
 0x19c   : > { %v709_v12 = vmul.f32 0.00390625, %v691_v47 }
 0x19d   : > { %v732_v15 = vsel %vm333_vm0, %v724_v35, 0.0 }
 0x19e   : > { %v725_v53 = vmul.f32 %v717_v25, %v709_v12  ;;  %v733_v63 = vadd.f32 %v732_v15, %v731_v19 }
 0x19f   : > { %v694_v21 = vpop.xlane.xlu0 %693 }
 0x1a0   : > { %v710_v61 = vmul.f32 0.00390625, %v694_v21  ;;  %v734_v54 = vsel %vm333_vm0, %v725_v53, 0.0 }
 0x1a1   : > { %v735_v7 = vadd.f32 %v734_v54, %v733_v63 }
 0x1a2   : > { %v726_v11 = vmul.f32 %v718_v51, %v710_v61 }
 0x1a4   : > { %v736_v41 = vsel %vm333_vm0, %v726_v11, 0.0  ;;  %v752_v11 = vld [vmem:[%s1559_s2 + $0x40] sm:$0x1] }
 0x1a5   : > { %v737_v29 = vadd.f32 %v736_v41, %v735_v7 }
 0x1a6   : > { %v697_v62 = vpop.xlane.xlu1 %696 }
 0x1a7   : > { %v711_v2 = vmul.f32 0.00390625, %v697_v62 }
 0x1a8   : > { %v700_v44 = vpop.xlane.xlu0 %699 }
 0x1a9   : > { %v727_v28 = vmul.f32 %v719_v60, %v711_v2  ;;  %v712_v22 = vmul.f32 0.00390625, %v700_v44 }
 0x1ab   : > { %v738_v17 = vsel %vm333_vm0, %v727_v28, 0.0  ;;  %v703_v26 = vpop.xlane.xlu1 %702  ;;  %v728_v36 = vmul.f32 %v720_v10, %v712_v22 }
 0x1ac   : > { %v713_v39 = vmul.f32 0.00390625, %v703_v26  ;;  %v739_v42 = vadd.f32 %v738_v17, %v737_v29  ;;  %v706_v38 = vpop.xlane.xlu0 %705 }
 0x1ad   : > { %v740_v45 = vsel %vm333_vm0, %v728_v36, 0.0  ;;  %v714_v58 = vmul.f32 0.00390625, %v706_v38 }
 0x1ae   : > { %v729_v47 = vmul.f32 %v721_v56, %v713_v39  ;;  %v741_v48 = vadd.f32 %v740_v45, %v739_v42 }
 0x1af   : > { %v730_v32 = vmul.f32 %v722_v50, %v714_v58 }
 0x1b0   : > { %v742_v12 = vsel %vm333_vm0, %v729_v47, 0.0 }
 0x1b1   : > { %v743_v25 = vadd.f32 %v742_v12, %v741_v48  ;;  %v744_v35 = vsel %vm333_vm0, %v730_v32, 0.0 }
 0x1b3   : > { %v745_v21 = vadd.f32 %v744_v35, %v743_v25 }
 0x1b5   : > { %v746_v51 = vrot.slane %v745_v21, 4 }
 0x1b7   : > { %v747_v61 = vadd.f32 %v746_v51, %v745_v21 }
 0x1b9   : > { %v748_v52 = vrot.slane %v747_v61, 2 }
 0x1bb   : > { %v749_v53 = vadd.f32 %v748_v52, %v747_v61 }
 0x1bd   : > { %v750_v15 = vrot.slane %v749_v53, 1 }
 0x1bf   : > { %v751_v19 = vadd.f32 %v750_v15, %v749_v53 }
 0x1c1   : > { %v753_v54 = vadd.f32 %v752_v11, %v751_v19 }
 0x1c3   : > { %v754_v60 = vmax.f32 %v753_v54, 0.0 }
 0x1c5   : > { %v755_v62 = vmin.f32 %v754_v60, 6.0 }
 0x1c7   : > { %1016 = vmatmul.mubr.msk.f32.vlgmr.msra.gmra.mxu1 %vm333_vm0, %v755_v62 }
 0x1c8   : > { %866 = vmatpush1.bf16.msra.mxu1 %v681_v57  ;;  %889 = vmatprep.mubr.bf16.mxu1 %v1141_v0  ;;  %v1146_v0 = vmov 3  }
 0x1c9   : > { %867 = vmatprep.subr.bf16.mxu1 %v680_v14  ;;  %1073 = vset.pattern.permute.xlu1 %v1146_v0 }
 0x1ca   : > { %1074 = vset.pattern.permute.xlu0 %v1146_v0  ;;  %846 = vperm.xlu1 %1073, %v1250_v3   ;;  %v836_v3 = vld [vmem:[%s1561_s4] sm:$0xff] }
 0x1cb   : > { %850 = vperm.xlu0 %1074, %v1266_v9   ;;  %v837_v9 = vld [vmem:[%s1561_s4 + $0x8] sm:$0xff] }
 0x1cc   : > { %868 = vmatpush1.bf16.msra.mxu1 %v679_v46 }
 0x1cd   : > { %869 = vmatprep.subr.bf16.mxu1 %v678_v55 }
 0x1d0   : > { %870 = vmatpush1.bf16.msra.mxu1 %v677_v49  ;;  %v839_v49 = vshrl.u32 %v838_v24, 7 }
 0x1d1   : > { %871 = vmatprep.subr.bf16.mxu1 %v676_v31 }
 0x1d4   : > { %872 = vmatpush1.bf16.msra.mxu1 %v675_v16  ;;  %v840_v16 = vsub.s32 0, %v839_v49 }
 0x245   : > { %v847_v40 = vpop.permute.xlu1 %846 }
 0x246   : > { %v851_v14 = vpop.permute.xlu0 %850 }
 0x287   : > { %v828_v1 = vpop.f32.mrf.mxu1 }
 0x288   : > { %v829_v33 = vadd.f32 %v828_v1, %v758_v30 }
 0x289   : > { %v1017_v20 = vpop.f32.mrf.mxu1 }
 0x28a   : > { %v832_v27 = vadd.f32 3.0, %v829_v33 }
 0x28c   : > { %v833_v18 = vmax.f32 %v832_v27, 0.0 }
 0x28e   : > { %v834_v59 = vmin.f32 %v833_v18, 6.0 }
 0x290   : > { %v835_v55 = vmul.f32 0.16666667, %v834_v59 }
 0x292   : > { %v841_v34 = vrot.slane %v835_v55, %v840_v16 }
 0x294   : > { %v842_v13 = vmul.f32 %v841_v34, %v836_v3  ;;  %v843_v31 = vmul.f32 %v841_v34, %v837_v9 }
 0x296   : > { %v844_v23 = vpack.c.bf16 %v843_v31, %v842_v13 }
 0x298   : > { %1000 = vmatmul.mubr.msk.bf16.vlgmr.msra.gmra.mxu1 %vm853_vm2, %v844_v23 }
 0x358   : > { %v891_v43 = vpop.f32.mrf.mxu1 }
 0x359   : > { %v892_v46 = vadd.f32 %v891_v43, %v847_v40 }
 0x35a   : > { %v893_v37 = vpop.f32.mrf.mxu1 }
 0x35b   : > { %v900_v57 = vadd.f32 %v892_v46, %v1256_v6  ;;  %v894_v63 = vadd.f32 %v893_v37, %v847_v40 }
 0x35c   : > { %v895_v2 = vpop.f32.mrf.mxu1 }
 0x35d   : > { %904 = vst [vmem:[%s244_s29] sm:$0xff] %v900_v57  ;;  %v901_v41 = vadd.f32 %v894_v63, %v1252_v4  ;;  %v896_v7 = vadd.f32 %v895_v2, %v851_v14 }
 0x35e   : > { %v897_v28 = vpop.f32.mrf.mxu1 }
 0x35f   : > { %905 = vst [vmem:[%s244_s29 + $0x8] sm:$0xff] %v901_v41  ;;  %v902_v10 = vadd.f32 %v896_v7, %v1261_v8  ;;  %v898_v44 = vadd.f32 %v897_v28, %v851_v14 }
 0x361   : > { %906 = vst [vmem:[%s244_s29 + $0x10] sm:$0xff] %v902_v10  ;;  %v903_v6 = vadd.f32 %v898_v44, %v1254_v5 }
 0x363   : > { %907 = vst [vmem:[%s244_s29 + $0x18] sm:$0xff] %v903_v6 }
 0x364   : > { %1092 = shalt.err (!%p1089_p3)
}
 0x365   : > { %s1093_s18 = scalar_lea.hbm %s1515_s13, 512  ;;  %s1097_s26 = scalar_lea.hbm %s1563_s6, 1024 }
 0x366   : > { %p1094_p4 = scmp.ne.s32.totalorder %s1515_s13, %s1093_s18  ;;  %p1098_p9 = scmp.lt.s32.totalorder %s1515_s13, %s1563_s6 }
 0x367   : > { %p1099_p10 = scmp.lt.s32.totalorder %s1097_s26, %s1093_s18 }
 0x368   : > { %p1095_p7 = pnand %p1094_p4, %p1223_p5 }
 0x369   : > { %p1100_p11 = por %p1099_p10, %p1098_p9 }
 0x36a   : > { %p1096_p8 = pneg %p1095_p7 }
 0x36c   : > { %p1101_p12 = pnand %p1100_p11, %p1096_p8 }
 0x36e   : > { %1104 = shalt.err (!%p1101_p12)
}
 0x36f   : > { %s1148_s10 = smov 256   ;;  %s1149_s11 = smov 16  }
 0x370   : > { %1018 = dma.vmem_to_hbm [thread:$0]  (%p1223_p5), %s1509_s9, 512, %s1515_s13, %s1517_s14, %s1148_s10, %s1148_s10, %s1149_s11  }
 0x371 PF: > { %p1024_p13 = scmp.ge.s32.totalorder %s1139_s24, 2  ;;  %s937_s12 = sand.u32 1, %s1127_s21  }
 0x372   : > { %s938_s25 = scalar_lea.sflag [#allocation3], %s937_s12 }
 0x373   : > { %p1021_p0 = pnand %p1024_p13, %p1227_p6 }
 0x375   : > { %p1022_p1 = pneg %p1021_p0 }
 0x377   : > { %1122 = dma.done.wait (%p1022_p1), %s938_s25, 512  }
 0x378   : > { %1124 = vsyncadd (%p1022_p1), %s938_s25, 4294966784  ;;  %p16_p2 = scmp.ge.s32.totalorder %s1210_s27, 4   ;;  %s1566_s21 = smov %s1131_s22 }
 0x379   : > { %s1567_s22 = smov %s1135_s23  ;;  %s1568_s23 = smov %s1221_s30 }
 0x37a   : > { %s1569_s24 = smov %s1210_s27  ;;  %18 = sbr.rel (!%p16_p2) target bundleno = 3 (0x3), region = 79 }
 0x37f   :  { %943 = vsyncpa [#allocation3], 1 }
 0x380   :  { %945 = vsyncpa [#allocation3 + $0x1], 1 }

</bundles_post_ra>
